<compile_context>
chip_gen: v6e
topology: v6e:2x2x1
jax: 0.10.0
libtpu: 0.0.40
codegen_flags: <defaults>
</compile_context>

<pallas_src>
import functools

import jax
import jax.numpy as jnp
from jax.experimental import pallas as pl
from jax.experimental.pallas import tpu as pltpu

_LANE = 128
_SUBLANE = 8


def _round_up(a: int, m: int) -> int:
    return pl.cdiv(a, m) * m


def _vmem_capacity_bytes() -> int:
    try:
        return int(pltpu.get_tpu_info().vmem_capacity_bytes)
    except Exception:
        return 64 * 1024 * 1024  # conservative default (v7x per-core VMEM)


def _select_tiles(M, Hp, x_bytes, out_bytes, w_bytes, param_buffers, budget):
    """Pick (tm, tn): row tile and output-column tile of the weight."""
    min_tm = 2 * _SUBLANE

    def resident(tn):      # weight + bias blocks kept in VMEM
        return param_buffers * (Hp * tn + tn) * w_bytes

    def streamed(tm, tn):  # double-buffered x tile + out tile
        return 2 * tm * (Hp * x_bytes + tn * out_bytes)

    # Prefer a fully resident weight (tn = Hp); split output columns only if
    # it cannot fit next to a minimal streamed tile.
    tn = Hp
    while tn > _LANE and resident(tn) + streamed(min_tm, tn) > budget:
        tn = max(_LANE, _round_up(pl.cdiv(tn, 2), _LANE))

    rem = max(budget - resident(tn), 0)
    per_row = 2 * (Hp * x_bytes + tn * out_bytes)
    tm = (rem // per_row) // _SUBLANE * _SUBLANE
    tm = int(min(512, max(tm, _SUBLANE), _round_up(M, _SUBLANE)))
    return tm, tn


def _residual_dense_kernel(x_ref, w_ref, b_ref, o_ref, *, block_n, split_cols,
                           compute_dtype):
    """o = x @ W[:, blk] + b[blk] + x[:, blk]   (fn(x) + x, fn = Linear)."""
    x = x_ref[...]                                   # (tm, Hp), streamed
    y = jnp.dot(x.astype(compute_dtype), w_ref[...],
                preferred_element_type=jnp.float32)  # MXU, f32 accumulate
    y = y + b_ref[...].astype(jnp.float32)           # bias, broadcast over rows
    if split_cols:
        col0 = pl.multiple_of(pl.program_id(0) * block_n, _LANE)
        x_res = x_ref[:, pl.ds(col0, block_n)]       # residual column slice
    else:
        x_res = x
    y = y + x_res.astype(jnp.float32)                # the Residual add
    o_ref[...] = y.astype(o_ref.dtype)


@functools.partial(
    jax.jit,
    static_argnames=("tm", "tn", "compute_dtype", "stream_dtype",
                     "single_buffer_params", "vmem_limit"))
def _residual_dense_impl(x, w, b, *, tm, tn, compute_dtype, stream_dtype,
                         single_buffer_params, vmem_limit):
    B, S, H = x.shape
    M = B * S
    Hp = _round_up(H, _LANE)
    out_dtype = stream_dtype if stream_dtype is not None else x.dtype

    x2d = x.reshape(M, H)
    if stream_dtype is not None:
        x2d = x2d.astype(stream_dtype)               # halve streamed x bytes (opt-in)
    w_c = w.astype(compute_dtype)
    b2d = b.reshape(1, H).astype(jnp.float32)
    if Hp != H:
        # Rare ragged-H path: zero-pad the hidden dim up to a lane multiple.
        x2d = jnp.pad(x2d, ((0, 0), (0, Hp - H)))
        w_c = jnp.pad(w_c, ((0, Hp - H), (0, Hp - H)))
        b2d = jnp.pad(b2d, ((0, 0), (0, Hp - H)))

    nc = pl.cdiv(Hp, tn)   # weight column blocks (outer grid axis)
    nr = pl.cdiv(M, tm)    # row tiles (inner grid axis); no M padding

    kernel = functools.partial(
        _residual_dense_kernel, block_n=tn, split_cols=nc > 1,
        compute_dtype=compute_dtype)

    def _param_spec(shape, index_map):
        # Constant over the inner row axis -> single buffer is enough.
        if single_buffer_params:
            return pl.BlockSpec(shape, index_map, pipeline_mode=pl.Buffered(1))
        return pl.BlockSpec(shape, index_map)

    out2d = pl.pallas_call(
        kernel,
        out_shape=jax.ShapeDtypeStruct((M, Hp), out_dtype),
        grid=(nc, nr),
        in_specs=[
            pl.BlockSpec((tm, Hp), lambda j, i: (i, 0)),   # x rows, streamed
            _param_spec((Hp, tn), lambda j, i: (0, j)),    # W block, resident
            _param_spec((1, tn), lambda j, i: (0, j)),     # bias block, resident
        ],
        out_specs=pl.BlockSpec((tm, tn), lambda j, i: (i, j)),
        compiler_params=pltpu.CompilerParams(
            dimension_semantics=("parallel", "parallel"),
            vmem_limit_bytes=vmem_limit,
        ),
    )(x2d, w_c, b2d)

    if Hp != H:
        out2d = out2d[:, :H]
    return out2d.reshape(B, S, H)


_SINGLE_BUFFER_PARAMS = None  # lazily probed: does this JAX accept Buffered(1)?


def residual_dense(x, w, b, *, compute_dtype=jnp.bfloat16, stream_dtype=None):
    """x: [B, S, H], w: [H, H], b: [H] -> fn(x) + x with fn = Linear(H, H).

    stream_dtype=None keeps x / output in their original dtype (exact residual
    precision).  Set stream_dtype=jnp.bfloat16 for HBM-bound shapes to halve
    x/out traffic (residual add then uses bf16 x).
    """
    global _SINGLE_BUFFER_PARAMS
    B, S, H = x.shape
    M = B * S
    Hp = _round_up(H, _LANE)

    vmem_cap = _vmem_capacity_bytes()
    vmem_limit = int(vmem_cap * 0.85)   # below physical capacity (v7x headroom)
    tile_budget = int(vmem_cap * 0.75)  # leave room for Mosaic internal scratch

    x_bytes = jnp.dtype(stream_dtype if stream_dtype is not None else x.dtype).itemsize
    w_bytes = jnp.dtype(compute_dtype).itemsize

    def cfg(param_buffers):
        tm, tn = _select_tiles(M, Hp, x_bytes, x_bytes, w_bytes,
                               param_buffers, tile_budget)
        return dict(tm=tm, tn=tn, compute_dtype=compute_dtype,
                    stream_dtype=stream_dtype, vmem_limit=vmem_limit)

    if _SINGLE_BUFFER_PARAMS is None:
        try:
            out = _residual_dense_impl(x, w, b, single_buffer_params=True,
                                       **cfg(param_buffers=1))
            jax.block_until_ready(out)
            _SINGLE_BUFFER_PARAMS = True
            return out
        except Exception:
            _SINGLE_BUFFER_PARAMS = False  # fall back to default double-buffering

    param_buffers = 1 if _SINGLE_BUFFER_PARAMS else 2
    return _residual_dense_impl(x, w, b,
                                single_buffer_params=_SINGLE_BUFFER_PARAMS,
                                **cfg(param_buffers))


def reference(x, w, b, compute_dtype=jnp.bfloat16):
    """Same math (bf16 MXU operands, f32 accumulate, f32 bias/residual)."""
    y = jnp.einsum(
        "bsh,hd->bsd",
        x.astype(compute_dtype),
        w.astype(compute_dtype),
        preferred_element_type=jnp.float32,
    )
    return (y + b[None, None, :] + x.astype(jnp.float32)).astype(x.dtype)


if __name__ == "__main__":
    key = jax.random.PRNGKey(0)
    kx, kw, kb = jax.random.split(key, 3)

    # Small shapes consistent with Residual(Linear(H, H)) on [B, S, H] tokens.
    B, S, H = 2, 8, 32
    x = jax.random.normal(kx, (B, S, H), dtype=jnp.float32)
    w = jax.random.normal(kw, (H, H), dtype=jnp.float32) * 0.02
    b = jax.random.normal(kb, (H,), dtype=jnp.float32) * 0.02

    out = jax.block_until_ready(residual_dense(x, w, b))
    ref = reference(x, w, b)
    assert out.shape == (B, S, H)
    assert jnp.allclose(out, ref, atol=1e-2, rtol=1e-2), "mismatch vs reference (ragged-H path)"

    # Also exercise the unpadded fast path (H a multiple of 128).
    H2 = 128
    x2 = jax.random.normal(kx, (B, S, H2), dtype=jnp.float32)
    w2 = jax.random.normal(kw, (H2, H2), dtype=jnp.float32) * 0.02
    b2 = jax.random.normal(kb, (H2,), dtype=jnp.float32) * 0.02
    out2 = jax.block_until_ready(residual_dense(x2, w2, b2))
    assert jnp.allclose(out2, reference(x2, w2, b2), atol=1e-2, rtol=1e-2), \
        "mismatch vs reference (lane-aligned path)"

    print("KERNEL_OK")
</pallas_src>

<mosaic_0001>
module attributes {stable_mosaic.version = 11 : i64} {
  func.func @_residual_dense_kernel(%arg0: i32, %arg1: i32, %arg2: memref<16x128xf32, #tpu.memory_space<vmem>>, %arg3: memref<128x128xbf16, #tpu.memory_space<vmem>>, %arg4: memref<1x128xf32, #tpu.memory_space<vmem>>, %arg5: memref<16x128xf32, #tpu.memory_space<vmem>>) attributes {dimension_semantics = [#tpu.dimension_semantics<parallel>, #tpu.dimension_semantics<parallel>], iteration_bounds = array<i64: 1, 1>, scalar_prefetch = 0 : i64, scratch_operands = 0 : i64, tpu.core_type = #tpu.core_type<tc>, window_params = [{transform_indices = @transform_0, window_bounds = array<i64: 16, 128>}, {pipeline_mode = #tpu.pipeline_mode<synchronous>, transform_indices = @transform_1, window_bounds = array<i64: 128, 128>}, {pipeline_mode = #tpu.pipeline_mode<synchronous>, transform_indices = @transform_2, window_bounds = array<i64: 1, 128>}, {transform_indices = @transform_3, window_bounds = array<i64: 16, 128>}]} {
    %c0 = arith.constant 0 : index
    %c0_0 = arith.constant 0 : index
    %0 = vector.load %arg2[%c0, %c0_0] : memref<16x128xf32, #tpu.memory_space<vmem>>, vector<16x128xf32>
    %1 = arith.truncf %0 : vector<16x128xf32> to vector<16x128xbf16>
    %c0_1 = arith.constant 0 : index
    %c0_2 = arith.constant 0 : index
    %2 = vector.load %arg3[%c0_1, %c0_2] : memref<128x128xbf16, #tpu.memory_space<vmem>>, vector<128x128xbf16>
    %cst = arith.constant dense<0.000000e+00> : vector<16x128xf32>
    %3 = tpu.matmul %1, %2, %cst {dimension_numbers = #tpu.dot_dimension_numbers<[1], [0], [0], [1], [0, 0, 1, 1], [], []>} : vector<16x128xbf16>, vector<128x128xbf16>, vector<16x128xf32> -> vector<16x128xf32>
    %c0_3 = arith.constant 0 : index
    %c0_4 = arith.constant 0 : index
    %4 = vector.load %arg4[%c0_3, %c0_4] : memref<1x128xf32, #tpu.memory_space<vmem>>, vector<1x128xf32>
    %5 = vector.broadcast %4 : vector<1x128xf32> to vector<16x128xf32>
    %6 = arith.addf %3, %5 : vector<16x128xf32>
    %7 = arith.addf %6, %0 : vector<16x128xf32>
    %c0_5 = arith.constant 0 : index
    %c0_6 = arith.constant 0 : index
    %8 = vector.load %arg5[%c0_5, %c0_6] : memref<16x128xf32, #tpu.memory_space<vmem>>, vector<16x128xf32>
    tpu.vector_store %arg5[%c0_5, %c0_6], %7 {strides = array<i32>} : memref<16x128xf32, #tpu.memory_space<vmem>>, vector<16x128xf32>,
    return
  }
  func.func @transform_0(%arg0: i32, %arg1: i32) -> (i32, i32) {
    %c0_i32 = arith.constant 0 : i32
    %c0_i32_0 = arith.constant 0 : i32
    return %arg1, %c0_i32 : i32, i32
  }
  func.func @transform_1(%arg0: i32, %arg1: i32) -> (i32, i32) {
    %c0_i32 = arith.constant 0 : i32
    %c0_i32_0 = arith.constant 0 : i32
    return %c0_i32, %arg0 : i32, i32
  }
  func.func @transform_2(%arg0: i32, %arg1: i32) -> (i32, i32) {
    %c0_i32 = arith.constant 0 : i32
    %c0_i32_0 = arith.constant 0 : i32
    return %c0_i32, %arg0 : i32, i32
  }
  func.func @transform_3(%arg0: i32, %arg1: i32) -> (i32, i32) {
    %c0_i32 = arith.constant 0 : i32
    return %arg1, %arg0 : i32, i32
  }
}

module attributes {stable_mosaic.version = 11 : i64} {
  func.func @_residual_dense_kernel(%arg0: i32, %arg1: i32, %arg2: memref<16x128xf32, #tpu.memory_space<vmem>>, %arg3: memref<128x128xbf16, #tpu.memory_space<vmem>>, %arg4: memref<1x128xf32, #tpu.memory_space<vmem>>, %arg5: memref<16x128xf32, #tpu.memory_space<vmem>>) attributes {dimension_semantics = [#tpu.dimension_semantics<parallel>, #tpu.dimension_semantics<parallel>], iteration_bounds = array<i64: 1, 1>, scalar_prefetch = 0 : i64, scratch_operands = 0 : i64, tpu.core_type = #tpu.core_type<tc>, window_params = [{transform_indices = @transform_0, window_bounds = array<i64: 16, 128>}, {transform_indices = @transform_1, window_bounds = array<i64: 128, 128>}, {transform_indices = @transform_2, window_bounds = array<i64: 1, 128>}, {transform_indices = @transform_3, window_bounds = array<i64: 16, 128>}]} {
    %c0 = arith.constant 0 : index
    %c0_0 = arith.constant 0 : index
    %0 = vector.load %arg2[%c0, %c0_0] : memref<16x128xf32, #tpu.memory_space<vmem>>, vector<16x128xf32>
    %1 = arith.truncf %0 : vector<16x128xf32> to vector<16x128xbf16>
    %c0_1 = arith.constant 0 : index
    %c0_2 = arith.constant 0 : index
    %2 = vector.load %arg3[%c0_1, %c0_2] : memref<128x128xbf16, #tpu.memory_space<vmem>>, vector<128x128xbf16>
    %cst = arith.constant dense<0.000000e+00> : vector<16x128xf32>
    %3 = tpu.matmul %1, %2, %cst {dimension_numbers = #tpu.dot_dimension_numbers<[1], [0], [0], [1], [0, 0, 1, 1], [], []>} : vector<16x128xbf16>, vector<128x128xbf16>, vector<16x128xf32> -> vector<16x128xf32>
    %c0_3 = arith.constant 0 : index
    %c0_4 = arith.constant 0 : index
    %4 = vector.load %arg4[%c0_3, %c0_4] : memref<1x128xf32, #tpu.memory_space<vmem>>, vector<1x128xf32>
    %5 = vector.broadcast %4 : vector<1x128xf32> to vector<16x128xf32>
    %6 = arith.addf %3, %5 : vector<16x128xf32>
    %7 = arith.addf %6, %0 : vector<16x128xf32>
    %c0_5 = arith.constant 0 : index
    %c0_6 = arith.constant 0 : index
    %8 = vector.load %arg5[%c0_5, %c0_6] : memref<16x128xf32, #tpu.memory_space<vmem>>, vector<16x128xf32>
    tpu.vector_store %arg5[%c0_5, %c0_6], %7 {strides = array<i32>} : memref<16x128xf32, #tpu.memory_space<vmem>>, vector<16x128xf32>,
    return
  }
  func.func @transform_0(%arg0: i32, %arg1: i32) -> (i32, i32) {
    %c0_i32 = arith.constant 0 : i32
    %c0_i32_0 = arith.constant 0 : i32
    return %arg1, %c0_i32 : i32, i32
  }
  func.func @transform_1(%arg0: i32, %arg1: i32) -> (i32, i32) {
    %c0_i32 = arith.constant 0 : i32
    %c0_i32_0 = arith.constant 0 : i32
    return %c0_i32, %arg0 : i32, i32
  }
  func.func @transform_2(%arg0: i32, %arg1: i32) -> (i32, i32) {
    %c0_i32 = arith.constant 0 : i32
    %c0_i32_0 = arith.constant 0 : i32
    return %c0_i32, %arg0 : i32, i32
  }
  func.func @transform_3(%arg0: i32, %arg1: i32) -> (i32, i32) {
    %c0_i32 = arith.constant 0 : i32
    return %arg1, %arg0 : i32, i32
  }
}

</mosaic_0001>

<bundles_post_ra>
// kernel: _residual_dense_impl.1
= control target key start
LH: loop header
LB: loop body
LE: loop exit
PB: predicated region body
PF: predicated region fallthrough
CT: control target
= control target key end

     0   :  { %v186_v0 = vmov 0.0   ;;  %vm187_vm0 = vmmov 0   ;;  %s247_s1 = inlined_call_operand.vmem [shape: bf16[128,128], index: 1, kind: input, shape index: {}]   ;;  %s248_s0 = inlined_call_operand.vmem [shape: f32[16,128], index: 0, kind: input, shape index: {}]   ;;  %s249_s2 = inlined_call_operand.vmem [shape: f32[1,128], index: 2, kind: input, shape index: {}]   ;;  %s250_s3 = inlined_call_operand.vmem [shape: f32[16,128], index: 3, kind: output, shape index: {}]  }
   0x1   :  { %156 = vmatprep.subr.bf16.mxu0 %v186_v0  ;;  %v178_v1 = vld [vmem:[%s247_s1 + $0x38] sm:$0xff]   ;;  %172 = vmatprep.mubr.msk.bf16.mxu0 %vm187_vm0, %v186_v0  ;;  %v179_v2 = vld [vmem:[%s247_s1 + $0x30] sm:$0xff]   ;;  %v180_v3 = vld [vmem:[%s247_s1 + $0x28] sm:$0xff]  }
   0x2   :  { %157 = vmatpush3.bf16.msra.mxu0 %v178_v1  ;;  %v181_v4 = vld [vmem:[%s247_s1 + $0x20] sm:$0xff]   ;;  %v182_v5 = vld [vmem:[%s247_s1 + $0x18] sm:$0xff]   ;;  %v183_v6 = vld [vmem:[%s247_s1 + $0x10] sm:$0xff]  }
   0x3   :  { %158 = vmatprep.subr.bf16.mxu0 %v186_v0  ;;  %v184_v7 = vld [vmem:[%s247_s1 + $0x8] sm:$0xff]   ;;  %v185_v8 = vld [vmem:[%s247_s1] sm:$0xff]  }
   0x4   :  { %v15_v9 = vld [vmem:[%s248_s0] sm:$0xff]  ;;  %v16_v10 = vld [vmem:[%s248_s0 + $0x8] sm:$0xff] }
   0x5   :  { %v17_v11 = vpack.c.bf16 %v16_v10, %v15_v9  ;;  %v138_v12 = vld [vmem:[%s249_s2] ss:$0 sm:$0xff] }
   0x6   :  { %159 = vmatpush3.bf16.msra.mxu0 %v179_v2 }
   0x7   :  { %160 = vmatprep.subr.bf16.mxu0 %v186_v0 }
   0xa   :  { %161 = vmatpush3.bf16.msra.mxu0 %v180_v3 }
   0xb   :  { %162 = vmatprep.subr.bf16.mxu0 %v186_v0 }
   0xe   :  { %163 = vmatpush3.bf16.msra.mxu0 %v181_v4 }
   0xf   :  { %164 = vmatprep.subr.bf16.mxu0 %v186_v0 }
  0x12   :  { %165 = vmatpush3.bf16.msra.mxu0 %v182_v5 }
  0x13   :  { %166 = vmatprep.subr.bf16.mxu0 %v186_v0 }
  0x16   :  { %167 = vmatpush3.bf16.msra.mxu0 %v183_v6 }
  0x17   :  { %168 = vmatprep.subr.bf16.mxu0 %v186_v0 }
  0x1a   :  { %169 = vmatpush3.bf16.msra.mxu0 %v184_v7 }
  0x1b   :  { %170 = vmatprep.subr.bf16.mxu0 %v186_v0 }
  0x1e   :  { %171 = vmatpush3.bf16.msra.mxu0 %v185_v8 }
  0x21   :  { %173 = vmatmul.mubr.bf16.vlgmr.msra.gmra.mxu0 %v17_v11 }
  0xe1   :  { %v123_v13 = vpop.f32.mrf.mxu0 }
  0xe2   :  { %v124_v14 = vadd.f32 %v138_v12, %v123_v13 }
  0xe3   :  { %v174_v15 = vpop.f32.mrf.mxu0 }
  0xe4   :  { %v130_v16 = vadd.f32 %v124_v14, %v15_v9 }
  0xe5   :  { %v126_v17 = vpop.f32.mrf.mxu0 }
  0xe6   :  { %132 = vst [vmem:[%s250_s3] sm:$0xff] %v130_v16  ;;  %v127_v18 = vadd.f32 %v138_v12, %v126_v17 }
  0xe7   :  { %v175_v19 = vpop.f32.mrf.mxu0 }
  0xe8   :  { %v131_v20 = vadd.f32 %v127_v18, %v16_v10 }
  0xea   :  { %133 = vst [vmem:[%s250_s3 + $0x8] sm:$0xff] %v131_v20 }

// kernel: _residual_dense_impl.1
= control target key start
LH: loop header
LB: loop body
LE: loop exit
PB: predicated region body
PF: predicated region fallthrough
CT: control target
= control target key end

     0   :  { %v186_v0 = vmov 0.0   ;;  %vm187_vm0 = vmmov 0   ;;  %s247_s1 = inlined_call_operand.vmem [shape: bf16[128,128], index: 1, kind: input, shape index: {}]   ;;  %s248_s0 = inlined_call_operand.vmem [shape: f32[16,128], index: 0, kind: input, shape index: {}]   ;;  %s249_s2 = inlined_call_operand.vmem [shape: f32[1,128], index: 2, kind: input, shape index: {}]   ;;  %s250_s3 = inlined_call_operand.vmem [shape: f32[16,128], index: 3, kind: output, shape index: {}]  }
   0x1   :  { %156 = vmatprep.subr.bf16.mxu0 %v186_v0  ;;  %v178_v1 = vld [vmem:[%s247_s1 + $0x38] sm:$0xff]   ;;  %172 = vmatprep.mubr.msk.bf16.mxu0 %vm187_vm0, %v186_v0  ;;  %v179_v2 = vld [vmem:[%s247_s1 + $0x30] sm:$0xff]   ;;  %v180_v3 = vld [vmem:[%s247_s1 + $0x28] sm:$0xff]  }
   0x2   :  { %157 = vmatpush3.bf16.msra.mxu0 %v178_v1  ;;  %v181_v4 = vld [vmem:[%s247_s1 + $0x20] sm:$0xff]   ;;  %v182_v5 = vld [vmem:[%s247_s1 + $0x18] sm:$0xff]   ;;  %v183_v6 = vld [vmem:[%s247_s1 + $0x10] sm:$0xff]  }
   0x3   :  { %158 = vmatprep.subr.bf16.mxu0 %v186_v0  ;;  %v184_v7 = vld [vmem:[%s247_s1 + $0x8] sm:$0xff]   ;;  %v185_v8 = vld [vmem:[%s247_s1] sm:$0xff]  }
   0x4   :  { %v15_v9 = vld [vmem:[%s248_s0] sm:$0xff]  ;;  %v16_v10 = vld [vmem:[%s248_s0 + $0x8] sm:$0xff] }
   0x5   :  { %v17_v11 = vpack.c.bf16 %v16_v10, %v15_v9  ;;  %v138_v12 = vld [vmem:[%s249_s2] ss:$0 sm:$0xff] }
   0x6   :  { %159 = vmatpush3.bf16.msra.mxu0 %v179_v2 }
   0x7   :  { %160 = vmatprep.subr.bf16.mxu0 %v186_v0 }
   0xa   :  { %161 = vmatpush3.bf16.msra.mxu0 %v180_v3 }
   0xb   :  { %162 = vmatprep.subr.bf16.mxu0 %v186_v0 }
   0xe   :  { %163 = vmatpush3.bf16.msra.mxu0 %v181_v4 }
   0xf   :  { %164 = vmatprep.subr.bf16.mxu0 %v186_v0 }
  0x12   :  { %165 = vmatpush3.bf16.msra.mxu0 %v182_v5 }
  0x13   :  { %166 = vmatprep.subr.bf16.mxu0 %v186_v0 }
  0x16   :  { %167 = vmatpush3.bf16.msra.mxu0 %v183_v6 }
  0x17   :  { %168 = vmatprep.subr.bf16.mxu0 %v186_v0 }
  0x1a   :  { %169 = vmatpush3.bf16.msra.mxu0 %v184_v7 }
  0x1b   :  { %170 = vmatprep.subr.bf16.mxu0 %v186_v0 }
  0x1e   :  { %171 = vmatpush3.bf16.msra.mxu0 %v185_v8 }
  0x21   :  { %173 = vmatmul.mubr.bf16.vlgmr.msra.gmra.mxu0 %v17_v11 }
  0xe1   :  { %v123_v13 = vpop.f32.mrf.mxu0 }
  0xe2   :  { %v124_v14 = vadd.f32 %v138_v12, %v123_v13 }
  0xe3   :  { %v174_v15 = vpop.f32.mrf.mxu0 }
  0xe4   :  { %v130_v16 = vadd.f32 %v124_v14, %v15_v9 }
  0xe5   :  { %v126_v17 = vpop.f32.mrf.mxu0 }
  0xe6   :  { %132 = vst [vmem:[%s250_s3] sm:$0xff] %v130_v16  ;;  %v127_v18 = vadd.f32 %v138_v12, %v126_v17 }
  0xe7   :  { %v175_v19 = vpop.f32.mrf.mxu0 }
  0xe8   :  { %v131_v20 = vadd.f32 %v127_v18, %v16_v10 }
  0xea   :  { %133 = vst [vmem:[%s250_s3 + $0x8] sm:$0xff] %v131_v20 }

</bundles_post_ra>
